<compile_context>
chip_gen: v5e
topology: v5e:2x2
jax: 0.10.0
libtpu: 0.0.40
codegen_flags: <defaults>
</compile_context>

<pallas_src>
import functools
import math

import jax
import jax.numpy as jnp
from jax import lax
from jax.experimental import pallas as pl
from jax.experimental.pallas import tpu as pltpu


def _round_up(x, m):
    return (x + m - 1) // m * m


def _pick_block_rows(m, e):
    """Rows per block (lane axis).  Multiple of 128, ~<=512 KiB f32 per operand block."""
    budget_elems = 128 * 1024                       # 512 KiB of f32 per operand block
    tb = max(128, min(2048, (budget_elems // max(1, e)) // 128 * 128))
    return min(tb, max(128, _round_up(m, 128)))


# --------------------------- sublane roll probe ------------------------------

_SUBLANE_ROLL_OK = None


def _sublane_roll_supported():
    """Probe whether pltpu.roll along the sublane axis lowers on this toolchain."""
    global _SUBLANE_ROLL_OK
    if _SUBLANE_ROLL_OK is None:
        try:
            def probe(x_ref, o_ref):
                o_ref[...] = pltpu.roll(x_ref[...], 5, axis=0)

            x = jnp.arange(32 * 256, dtype=jnp.float32).reshape(32, 256)
            got = jax.block_until_ready(
                pl.pallas_call(
                    probe, out_shape=jax.ShapeDtypeStruct((32, 256), jnp.float32))(x))
            # Either roll direction is fine for our use (S_k is direction agnostic).
            _SUBLANE_ROLL_OK = bool(
                jnp.array_equal(got, jnp.roll(x, 5, axis=0))
                or jnp.array_equal(got, jnp.roll(x, -5, axis=0)))
        except Exception:  # fall back to slice+concat rolls
            _SUBLANE_ROLL_OK = False
    return _SUBLANE_ROLL_OK


# ------------------------------- kernel body ---------------------------------

def _row_losses(p_ref, t_ref, use_hw_roll):
    """Per-row CRPS losses for one (E, TB) block; returns (1, TB) float32.

    Rows (flattened leading dims) live on lanes, ensemble members on sublanes.
    """
    p = p_ref[...].astype(jnp.float32)              # (E, TB)
    t = t_ref[...].astype(jnp.float32)              # (E, TB) or (1, TB) -> splat

    e = p.shape[0]

    def roll_members(k):
        if use_hw_roll and e % 8 == 0:
            return pltpu.roll(p, k, axis=0)         # XLU sublane rotate
        return jnp.roll(p, k, axis=0)               # slice + concat fallback

    # Single accumulator, pre-weighted so one final 1/E^2 scale applies:
    #   loss = (E * sum_i|p_i - t| - sum_k w_k * S_k) / E^2,
    # w_k = 1 for k = 1..ceil(E/2)-1 and w_{E/2} = 0.5 for even E.
    acc = jnp.abs(p - t) * jnp.float32(e)           # (E, TB)
    for k in range(1, (e + 1) // 2):
        acc = acc - jnp.abs(p - roll_members(k))
    if e % 2 == 0 and e > 1:
        acc = acc - 0.5 * jnp.abs(p - roll_members(e // 2))
    # TODO(synk): for very large E (>= ~256) replace the unrolled shift loop by
    # the sorted-value identity (sort + one MXU matvec).
    return jnp.sum(acc, axis=0, keepdims=True) * jnp.float32(1.0 / (e * e))


def _crps_sum_kernel(p_ref, t_ref, o_ref, *, nsteps, rows, block_rows, use_hw_roll):
    c = pl.program_id(0)      # core / parallel axis
    j = pl.program_id(1)      # sequential row-block axis

    @pl.when(j == 0)
    def _():
        o_ref[...] = jnp.zeros_like(o_ref)

    losses = _row_losses(p_ref, t_ref, use_hw_roll)                   # (1, TB)
    blk = c * nsteps + j
    lane = lax.broadcasted_iota(jnp.int32, losses.shape, 1)
    valid = (lane + blk * block_rows) < rows
    o_ref[...] += jnp.where(valid, losses, 0.0)[None]                 # (1, 1, TB)


def _crps_rows_kernel(p_ref, t_ref, o_ref, *, rows, block_rows, use_hw_roll):
    i = pl.program_id(0)
    losses = _row_losses(p_ref, t_ref, use_hw_roll)                   # (1, TB)
    lane = lax.broadcasted_iota(jnp.int32, losses.shape, 1)
    valid = (lane + i * block_rows) < rows
    o_ref[...] = jnp.where(valid, losses, 0.0)[None]                  # (1, 1, TB)


# -------------------------------- wrapper -------------------------------------

def crps_loss(predicted, target, reduction="mean", block_rows=None):
    predicted = jnp.asarray(predicted)
    target = jnp.asarray(target)

    e = predicted.shape[-1]
    lead = predicted.shape[:-1]
    m = math.prod(lead)
    out_dtype = jnp.result_type(predicted.dtype, target.dtype)

    # Right-align target dims (NumPy / torch broadcasting).
    t = target
    if t.ndim < predicted.ndim:
        t = t.reshape((1,) * (predicted.ndim - t.ndim) + t.shape)

    # Rows on the lane axis, ensemble members on sublanes.
    p2 = predicted.reshape(m, e).T                                    # (E, M)
    if t.shape[-1] == 1:
        # Target carries no ensemble-member axis: keep it E-times smaller.
        t2 = jnp.broadcast_to(t, lead + (1,)).reshape(1, m)           # (1, M)
        te = 1
    else:
        t2 = jnp.broadcast_to(t, predicted.shape).reshape(m, e).T     # (E, M)
        te = e

    if block_rows is not None:
        tb = max(128, _round_up(int(block_rows), 128))
    else:
        tb = _pick_block_rows(m, e)
    nblk = pl.cdiv(m, tb)
    use_hw_roll = _sublane_roll_supported()

    if reduction in ("mean", "sum"):
        ncores = 2 if nblk > 1 else 1          # lets v7x's two TCs split the rows
        nsteps = pl.cdiv(nblk, ncores)

        def blk_map(c, j):
            # Clamp so a possible overhang step on the last core re-reads a valid
            # block; its rows are fully masked out in-kernel.
            return (0, jnp.minimum(c * nsteps + j, nblk - 1))

        partials = pl.pallas_call(
            functools.partial(_crps_sum_kernel, nsteps=nsteps, rows=m,
                              block_rows=tb, use_hw_roll=use_hw_roll),
            out_shape=jax.ShapeDtypeStruct((ncores, 1, tb), jnp.float32),
            grid=(ncores, nsteps),
            in_specs=[pl.BlockSpec((e, tb), blk_map),
                      pl.BlockSpec((te, tb), blk_map)],
            out_specs=pl.BlockSpec((1, 1, tb), lambda c, j: (c, 0, 0)),
            compiler_params=pltpu.CompilerParams(
                dimension_semantics=("parallel", "arbitrary")),
        )(p2, t2)
        total = jnp.sum(partials)              # one tree-reduce of lane-dense partials
        if reduction == "mean":
            total = total / m
        return total.astype(out_dtype)

    if reduction == "none":
        out = pl.pallas_call(
            functools.partial(_crps_rows_kernel, rows=m, block_rows=tb,
                              use_hw_roll=use_hw_roll),
            out_shape=jax.ShapeDtypeStruct((nblk, 1, tb), jnp.float32),
            grid=(nblk,),
            in_specs=[pl.BlockSpec((e, tb), lambda i: (0, i)),
                      pl.BlockSpec((te, tb), lambda i: (0, i))],
            out_specs=pl.BlockSpec((1, 1, tb), lambda i: (i, 0, 0)),
            compiler_params=pltpu.CompilerParams(
                dimension_semantics=("parallel",)),
        )(p2, t2)
        return out.reshape(-1)[:m].reshape(lead).astype(out_dtype)

    raise ValueError(f"unsupported reduction: {reduction!r}")


# ------------------------------- reference ------------------------------------

def _crps_ref(predicted, target, reduction="mean"):
    err = jnp.mean(jnp.abs(predicted - target), axis=-1)
    var = jnp.mean(jnp.abs(predicted[..., :, None] - predicted[..., None, :]),
                   axis=(-1, -2))
    out = err - 0.5 * var
    if reduction == "mean":
        return jnp.mean(out)
    if reduction == "sum":
        return jnp.sum(out)
    return out


# --------------------------------- main ---------------------------------------

if __name__ == "__main__":
    key = jax.random.PRNGKey(0)
    kp, kt, kq = jax.random.split(key, 3)

    # batch=2, seq=96, ensemble=32
    predicted = jax.random.normal(kp, (2, 96, 32), dtype=jnp.float32)
    target = jax.random.normal(kt, (2, 96, 32), dtype=jnp.float32)

    def check(pred, tgt, reduction, block_rows=None):
        got = jax.block_until_ready(
            crps_loss(pred, tgt, reduction, block_rows=block_rows))
        want = jax.block_until_ready(_crps_ref(pred, tgt, reduction))
        assert got.shape == want.shape, (reduction, got.shape, want.shape)
        assert bool(jnp.all(jnp.isfinite(got))), reduction
        assert bool(jnp.allclose(got, want, rtol=1e-5, atol=1e-5)), (reduction, block_rows)

    for reduction in ("mean", "sum", "none"):
        check(predicted, target, reduction)                   # single-block path
        check(predicted, target, reduction, block_rows=128)   # multi-block / two-core path

    # target without an ensemble-member axis (broadcast over the last dim)
    target_nomem = jax.random.normal(kt, (2, 96, 1), dtype=jnp.float32)
    check(predicted, target_nomem, "mean")
    check(predicted, target_nomem, "none", block_rows=128)

    # odd number of row blocks exercises the clamped overhang block on core 1
    pred_odd = jax.random.normal(kq, (3, 100, 32), dtype=jnp.float32)
    targ_odd = jax.random.normal(kt, (3, 100, 32), dtype=jnp.float32)
    check(pred_odd, targ_odd, "sum", block_rows=128)

    print("KERNEL_OK")
</pallas_src>

<mosaic_0001>
module attributes {stable_mosaic.version = 11 : i64} {
  func.func @probe(%arg0: memref<32x256xf32, #tpu.memory_space<vmem>>, %arg1: memref<32x256xf32, #tpu.memory_space<vmem>>) attributes {dimension_semantics = [], scalar_prefetch = 0 : i64, scratch_operands = 0 : i64, tpu.core_type = #tpu.core_type<tc>} {
    %c0 = arith.constant 0 : index
    %c0_0 = arith.constant 0 : index
    %0 = vector.load %arg0[%c0, %c0_0] : memref<32x256xf32, #tpu.memory_space<vmem>>, vector<32x256xf32>
    %c5_i32 = arith.constant 5 : i32
    %1 = tpu.dynamic_rotate %0 by %c5_i32 dim 0 : vector<32x256xf32>, i32 -> vector<32x256xf32>
    %c0_1 = arith.constant 0 : index
    %c0_2 = arith.constant 0 : index
    %2 = vector.load %arg1[%c0_1, %c0_2] : memref<32x256xf32, #tpu.memory_space<vmem>>, vector<32x256xf32>
    tpu.vector_store %arg1[%c0_1, %c0_2], %1 {strides = array<i32>} : memref<32x256xf32, #tpu.memory_space<vmem>>, vector<32x256xf32>,
    return
  }
}

module attributes {stable_mosaic.version = 11 : i64} {
  func.func @_crps_sum_kernel(%arg0: i32, %arg1: i32, %arg2: memref<32x256xf32, #tpu.memory_space<vmem>>, %arg3: memref<32x256xf32, #tpu.memory_space<vmem>>, %arg4: memref<1x1x256xf32, #tpu.memory_space<vmem>>) attributes {dimension_semantics = [#tpu.dimension_semantics<parallel>, #tpu.dimension_semantics<arbitrary>], iteration_bounds = array<i64: 1, 1>, scalar_prefetch = 0 : i64, scratch_operands = 0 : i64, tpu.core_type = #tpu.core_type<tc>, window_params = [{transform_indices = @transform_0, window_bounds = array<i64: 32, 256>}, {transform_indices = @transform_1, window_bounds = array<i64: 32, 256>}, {transform_indices = @transform_2, window_bounds = array<i64: 1, 1, 256>}]} {
    %c0_i32 = arith.constant 0 : i32
    %0 = arith.cmpi eq, %arg1, %c0_i32 : i32
    %1 = arith.extui %0 : i1 to i32
    %c0_i32_0 = arith.constant 0 : i32
    %2 = arith.cmpi ne, %1, %c0_i32_0 : i32
    scf.if %2 {
      %cst_14 = arith.constant 0.000000e+00 : f32
      %125 = vector.broadcast %cst_14 : f32 to vector<1x1x256xf32>
      %c0_15 = arith.constant 0 : index
      %c0_16 = arith.constant 0 : index
      %c0_17 = arith.constant 0 : index
      %126 = vector.load %arg4[%c0_15, %c0_16, %c0_17] : memref<1x1x256xf32, #tpu.memory_space<vmem>>, vector<1x1x256xf32>
      tpu.vector_store %arg4[%c0_15, %c0_16, %c0_17], %125 {strides = array<i32>} : memref<1x1x256xf32, #tpu.memory_space<vmem>>, vector<1x1x256xf32>,
    } else {
    }
    %c0 = arith.constant 0 : index
    %c0_1 = arith.constant 0 : index
    %3 = vector.load %arg2[%c0, %c0_1] : memref<32x256xf32, #tpu.memory_space<vmem>>, vector<32x256xf32>
    %c0_2 = arith.constant 0 : index
    %c0_3 = arith.constant 0 : index
    %4 = vector.load %arg3[%c0_2, %c0_3] : memref<32x256xf32, #tpu.memory_space<vmem>>, vector<32x256xf32>
    %5 = arith.subf %3, %4 : vector<32x256xf32>
    %6 = math.absf %5 : vector<32x256xf32>
    %cst = arith.constant 3.200000e+01 : f32
    %7 = vector.broadcast %cst : f32 to vector<32x256xf32>
    %8 = arith.mulf %6, %7 : vector<32x256xf32>
    %9 = vector.extract_strided_slice %3 {offsets = [31, 0], sizes = [1, 256], strides = [1, 1]} : vector<32x256xf32> to vector<1x256xf32>
    %10 = vector.extract_strided_slice %3 {offsets = [0, 0], sizes = [31, 256], strides = [1, 1]} : vector<32x256xf32> to vector<31x256xf32>
    %11 = tpu.concatenate %9, %10 in 0 : vector<1x256xf32>, vector<31x256xf32> -> vector<32x256xf32>
    %12 = arith.subf %3, %11 : vector<32x256xf32>
    %13 = math.absf %12 : vector<32x256xf32>
    %14 = arith.subf %8, %13 : vector<32x256xf32>
    %15 = vector.extract_strided_slice %3 {offsets = [30, 0], sizes = [2, 256], strides = [1, 1]} : vector<32x256xf32> to vector<2x256xf32>
    %16 = vector.extract_strided_slice %3 {offsets = [0, 0], sizes = [30, 256], strides = [1, 1]} : vector<32x256xf32> to vector<30x256xf32>
    %17 = tpu.concatenate %15, %16 in 0 : vector<2x256xf32>, vector<30x256xf32> -> vector<32x256xf32>
    %18 = arith.subf %3, %17 : vector<32x256xf32>
    %19 = math.absf %18 : vector<32x256xf32>
    %20 = arith.subf %14, %19 : vector<32x256xf32>
    %21 = vector.extract_strided_slice %3 {offsets = [29, 0], sizes = [3, 256], strides = [1, 1]} : vector<32x256xf32> to vector<3x256xf32>
    %22 = vector.extract_strided_slice %3 {offsets = [0, 0], sizes = [29, 256], strides = [1, 1]} : vector<32x256xf32> to vector<29x256xf32>
    %23 = tpu.concatenate %21, %22 in 0 : vector<3x256xf32>, vector<29x256xf32> -> vector<32x256xf32>
    %24 = arith.subf %3, %23 : vector<32x256xf32>
    %25 = math.absf %24 : vector<32x256xf32>
    %26 = arith.subf %20, %25 : vector<32x256xf32>
    %27 = vector.extract_strided_slice %3 {offsets = [28, 0], sizes = [4, 256], strides = [1, 1]} : vector<32x256xf32> to vector<4x256xf32>
    %28 = vector.extract_strided_slice %3 {offsets = [0, 0], sizes = [28, 256], strides = [1, 1]} : vector<32x256xf32> to vector<28x256xf32>
    %29 = tpu.concatenate %27, %28 in 0 : vector<4x256xf32>, vector<28x256xf32> -> vector<32x256xf32>
    %30 = arith.subf %3, %29 : vector<32x256xf32>
    %31 = math.absf %30 : vector<32x256xf32>
    %32 = arith.subf %26, %31 : vector<32x256xf32>
    %33 = vector.extract_strided_slice %3 {offsets = [27, 0], sizes = [5, 256], strides = [1, 1]} : vector<32x256xf32> to vector<5x256xf32>
    %34 = vector.extract_strided_slice %3 {offsets = [0, 0], sizes = [27, 256], strides = [1, 1]} : vector<32x256xf32> to vector<27x256xf32>
    %35 = tpu.concatenate %33, %34 in 0 : vector<5x256xf32>, vector<27x256xf32> -> vector<32x256xf32>
    %36 = arith.subf %3, %35 : vector<32x256xf32>
    %37 = math.absf %36 : vector<32x256xf32>
    %38 = arith.subf %32, %37 : vector<32x256xf32>
    %39 = vector.extract_strided_slice %3 {offsets = [26, 0], sizes = [6, 256], strides = [1, 1]} : vector<32x256xf32> to vector<6x256xf32>
    %40 = vector.extract_strided_slice %3 {offsets = [0, 0], sizes = [26, 256], strides = [1, 1]} : vector<32x256xf32> to vector<26x256xf32>
    %41 = tpu.concatenate %39, %40 in 0 : vector<6x256xf32>, vector<26x256xf32> -> vector<32x256xf32>
    %42 = arith.subf %3, %41 : vector<32x256xf32>
    %43 = math.absf %42 : vector<32x256xf32>
    %44 = arith.subf %38, %43 : vector<32x256xf32>
    %45 = vector.extract_strided_slice %3 {offsets = [25, 0], sizes = [7, 256], strides = [1, 1]} : vector<32x256xf32> to vector<7x256xf32>
    %46 = vector.extract_strided_slice %3 {offsets = [0, 0], sizes = [25, 256], strides = [1, 1]} : vector<32x256xf32> to vector<25x256xf32>
    %47 = tpu.concatenate %45, %46 in 0 : vector<7x256xf32>, vector<25x256xf32> -> vector<32x256xf32>
    %48 = arith.subf %3, %47 : vector<32x256xf32>
    %49 = math.absf %48 : vector<32x256xf32>
    %50 = arith.subf %44, %49 : vector<32x256xf32>
    %51 = vector.extract_strided_slice %3 {offsets = [24, 0], sizes = [8, 256], strides = [1, 1]} : vector<32x256xf32> to vector<8x256xf32>
    %52 = vector.extract_strided_slice %3 {offsets = [0, 0], sizes = [24, 256], strides = [1, 1]} : vector<32x256xf32> to vector<24x256xf32>
    %53 = tpu.concatenate %51, %52 in 0 : vector<8x256xf32>, vector<24x256xf32> -> vector<32x256xf32>
    %54 = arith.subf %3, %53 : vector<32x256xf32>
    %55 = math.absf %54 : vector<32x256xf32>
    %56 = arith.subf %50, %55 : vector<32x256xf32>
    %57 = vector.extract_strided_slice %3 {offsets = [23, 0], sizes = [9, 256], strides = [1, 1]} : vector<32x256xf32> to vector<9x256xf32>
    %58 = vector.extract_strided_slice %3 {offsets = [0, 0], sizes = [23, 256], strides = [1, 1]} : vector<32x256xf32> to vector<23x256xf32>
    %59 = tpu.concatenate %57, %58 in 0 : vector<9x256xf32>, vector<23x256xf32> -> vector<32x256xf32>
    %60 = arith.subf %3, %59 : vector<32x256xf32>
    %61 = math.absf %60 : vector<32x256xf32>
    %62 = arith.subf %56, %61 : vector<32x256xf32>
    %63 = vector.extract_strided_slice %3 {offsets = [22, 0], sizes = [10, 256], strides = [1, 1]} : vector<32x256xf32> to vector<10x256xf32>
    %64 = vector.extract_strided_slice %3 {offsets = [0, 0], sizes = [22, 256], strides = [1, 1]} : vector<32x256xf32> to vector<22x256xf32>
    %65 = tpu.concatenate %63, %64 in 0 : vector<10x256xf32>, vector<22x256xf32> -> vector<32x256xf32>
    %66 = arith.subf %3, %65 : vector<32x256xf32>
    %67 = math.absf %66 : vector<32x256xf32>
    %68 = arith.subf %62, %67 : vector<32x256xf32>
    %69 = vector.extract_strided_slice %3 {offsets = [21, 0], sizes = [11, 256], strides = [1, 1]} : vector<32x256xf32> to vector<11x256xf32>
    %70 = vector.extract_strided_slice %3 {offsets = [0, 0], sizes = [21, 256], strides = [1, 1]} : vector<32x256xf32> to vector<21x256xf32>
    %71 = tpu.concatenate %69, %70 in 0 : vector<11x256xf32>, vector<21x256xf32> -> vector<32x256xf32>
    %72 = arith.subf %3, %71 : vector<32x256xf32>
    %73 = math.absf %72 : vector<32x256xf32>
    %74 = arith.subf %68, %73 : vector<32x256xf32>
    %75 = vector.extract_strided_slice %3 {offsets = [20, 0], sizes = [12, 256], strides = [1, 1]} : vector<32x256xf32> to vector<12x256xf32>
    %76 = vector.extract_strided_slice %3 {offsets = [0, 0], sizes = [20, 256], strides = [1, 1]} : vector<32x256xf32> to vector<20x256xf32>
    %77 = tpu.concatenate %75, %76 in 0 : vector<12x256xf32>, vector<20x256xf32> -> vector<32x256xf32>
    %78 = arith.subf %3, %77 : vector<32x256xf32>
    %79 = math.absf %78 : vector<32x256xf32>
    %80 = arith.subf %74, %79 : vector<32x256xf32>
    %81 = vector.extract_strided_slice %3 {offsets = [19, 0], sizes = [13, 256], strides = [1, 1]} : vector<32x256xf32> to vector<13x256xf32>
    %82 = vector.extract_strided_slice %3 {offsets = [0, 0], sizes = [19, 256], strides = [1, 1]} : vector<32x256xf32> to vector<19x256xf32>
    %83 = tpu.concatenate %81, %82 in 0 : vector<13x256xf32>, vector<19x256xf32> -> vector<32x256xf32>
    %84 = arith.subf %3, %83 : vector<32x256xf32>
    %85 = math.absf %84 : vector<32x256xf32>
    %86 = arith.subf %80, %85 : vector<32x256xf32>
    %87 = vector.extract_strided_slice %3 {offsets = [18, 0], sizes = [14, 256], strides = [1, 1]} : vector<32x256xf32> to vector<14x256xf32>
    %88 = vector.extract_strided_slice %3 {offsets = [0, 0], sizes = [18, 256], strides = [1, 1]} : vector<32x256xf32> to vector<18x256xf32>
    %89 = tpu.concatenate %87, %88 in 0 : vector<14x256xf32>, vector<18x256xf32> -> vector<32x256xf32>
    %90 = arith.subf %3, %89 : vector<32x256xf32>
    %91 = math.absf %90 : vector<32x256xf32>
    %92 = arith.subf %86, %91 : vector<32x256xf32>
    %93 = vector.extract_strided_slice %3 {offsets = [17, 0], sizes = [15, 256], strides = [1, 1]} : vector<32x256xf32> to vector<15x256xf32>
    %94 = vector.extract_strided_slice %3 {offsets = [0, 0], sizes = [17, 256], strides = [1, 1]} : vector<32x256xf32> to vector<17x256xf32>
    %95 = tpu.concatenate %93, %94 in 0 : vector<15x256xf32>, vector<17x256xf32> -> vector<32x256xf32>
    %96 = arith.subf %3, %95 : vector<32x256xf32>
    %97 = math.absf %96 : vector<32x256xf32>
    %98 = arith.subf %92, %97 : vector<32x256xf32>
    %99 = vector.extract_strided_slice %3 {offsets = [16, 0], sizes = [16, 256], strides = [1, 1]} : vector<32x256xf32> to vector<16x256xf32>
    %100 = vector.extract_strided_slice %3 {offsets = [0, 0], sizes = [16, 256], strides = [1, 1]} : vector<32x256xf32> to vector<16x256xf32>
    %101 = tpu.concatenate %99, %100 in 0 : vector<16x256xf32>, vector<16x256xf32> -> vector<32x256xf32>
    %102 = arith.subf %3, %101 : vector<32x256xf32>
    %103 = math.absf %102 : vector<32x256xf32>
    %cst_4 = arith.constant 5.000000e-01 : f32
    %104 = vector.broadcast %cst_4 : f32 to vector<32x256xf32>
    %105 = arith.mulf %104, %103 : vector<32x256xf32>
    %106 = arith.subf %98, %105 : vector<32x256xf32>
    %cst_5 = arith.constant dense<0.000000e+00> : vector<256xf32>
    %107 = vector.multi_reduction <add>, %106, %cst_5 [0] : vector<32x256xf32> to vector<256xf32>
    %108 = vector.shape_cast %107 : vector<256xf32> to vector<1x256xf32>
    %cst_6 = arith.constant 9.765625E-4 : f32
    %109 = vector.broadcast %cst_6 : f32 to vector<1x256xf32>
    %110 = arith.mulf %108, %109 : vector<1x256xf32>
    %c1_i32 = arith.constant 1 : i32
    %111 = arith.muli %arg0, %c1_i32 : i32
    %112 = arith.addi %111, %arg1 : i32
    %113 = tpu.iota {dimensions = array<i32: 1>} : vector<1x256xi32>
    %c256_i32 = arith.constant 256 : i32
    %114 = arith.muli %112, %c256_i32 : i32
    %115 = vector.broadcast %114 : i32 to vector<1x256xi32>
    %116 = arith.addi %113, %115 : vector<1x256xi32>
    %c192_i32 = arith.constant 192 : i32
    %117 = vector.broadcast %c192_i32 : i32 to vector<1x256xi32>
    %118 = arith.cmpi slt, %116, %117 : vector<1x256xi32>
    %c0_7 = arith.constant 0 : index
    %c0_8 = arith.constant 0 : index
    %c0_9 = arith.constant 0 : index
    %119 = vector.load %arg4[%c0_7, %c0_8, %c0_9] : memref<1x1x256xf32, #tpu.memory_space<vmem>>, vector<1x1x256xf32>
    %cst_10 = arith.constant 0.000000e+00 : f32
    %120 = vector.broadcast %cst_10 : f32 to vector<1x256xf32>
    %121 = arith.select %118, %110, %120 : vector<1x256xi1>, vector<1x256xf32>
    %122 = vector.shape_cast %121 : vector<1x256xf32> to vector<1x1x256xf32>
    %123 = arith.addf %119, %122 : vector<1x1x256xf32>
    %c0_11 = arith.constant 0 : index
    %c0_12 = arith.constant 0 : index
    %c0_13 = arith.constant 0 : index
    %124 = vector.load %arg4[%c0_11, %c0_12, %c0_13] : memref<1x1x256xf32, #tpu.memory_space<vmem>>, vector<1x1x256xf32>
    tpu.vector_store %arg4[%c0_11, %c0_12, %c0_13], %123 {strides = array<i32>} : memref<1x1x256xf32, #tpu.memory_space<vmem>>, vector<1x1x256xf32>,
    return
  }
  func.func @transform_0(%arg0: i32, %arg1: i32) -> (i32, i32) {
    %c1_i32 = arith.constant 1 : i32
    %0 = arith.muli %arg0, %c1_i32 : i32
    %1 = arith.addi %0, %arg1 : i32
    %c0_i32 = arith.constant 0 : i32
    %2 = arith.minsi %1, %c0_i32 : i32
    %c0_i32_0 = arith.constant 0 : i32
    %c0_i32_1 = arith.constant 0 : i32
    return %c0_i32_0, %2 : i32, i32
  }
  func.func @transform_1(%arg0: i32, %arg1: i32) -> (i32, i32) {
    %c1_i32 = arith.constant 1 : i32
    %0 = arith.muli %arg0, %c1_i32 : i32
    %1 = arith.addi %0, %arg1 : i32
    %c0_i32 = arith.constant 0 : i32
    %2 = arith.minsi %1, %c0_i32 : i32
    %c0_i32_0 = arith.constant 0 : i32
    %c0_i32_1 = arith.constant 0 : i32
    return %c0_i32_0, %2 : i32, i32
  }
  func.func @transform_2(%arg0: i32, %arg1: i32) -> (i32, i32, i32) {
    %c0_i32 = arith.constant 0 : i32
    %c0_i32_0 = arith.constant 0 : i32
    %c0_i32_1 = arith.constant 0 : i32
    return %arg0, %c0_i32, %c0_i32_0 : i32, i32, i32
  }
}

</mosaic_0001>

<bundles_post_ra>
// kernel: tpu_custom_call.1
= control target key start
LH: loop header
LB: loop body
LE: loop exit
PB: predicated region body
PF: predicated region fallthrough
CT: control target
= control target key end

     0   :  { %6 = vsyncpa [#allocation3], 0  ;;  %s169_s0 = inlined_call_operand.hbm [shape: f32[32,256], index: 0, kind: input, shape index: {}]   ;;  %s170_s1 = inlined_call_operand.hbm [shape: f32[32,256], index: 1, kind: output, shape index: {}]  }
   0x1   :  { %7 = vsyncpa [#allocation4], 0  ;;  %s12_s8 = sshll.u32 %s169_s0, 4  ;;  %s135_s9 = smov [#allocation2]   ;;  %s13_s8 = int_to_ptr.hbm [resolvable:$true] %s12_s8 }
   0x2   :  { %s14_s10 = sshll.u32 %s135_s9, 4  ;;  %s136_s11 = smov 256   ;;  %s15_s10 = int_to_ptr.vmem [resolvable:$true] %s14_s10 }
   0x3   :  { %s137_s12 = smov 16  }
   0x4   :  { %20 = dma.hbm_to_vmem [thread:$0]  %s13_s8, 1024, %s15_s10, [#allocation3], %s136_s11, %s136_s11, %s137_s12  }
   0x5   :  { %131 = dma.done.wait [#allocation3], 1024  }
   0x6   :  { %132 = vsyncadd [#allocation3], 4294966272  ;;  %v41_v0 = vlaneseq  ;;  %v25_v2 = vld [vmem:[#allocation2] sm:$0xff]  ;;  %v31_v3 = vld [vmem:[#allocation2 + $0x30] sm:$0xff]  ;;  %s138_s0 = smov [#allocation5]   ;;  %s66_s16 = sshll.u32 %s170_s1, 4  ;;  %s67_s16 = int_to_ptr.hbm [resolvable:$true] %s66_s16 }
   0x7   :  { %v26_v4 = vld [vmem:[#allocation2 + $0x8] sm:$0xff]  ;;  %v33_v5 = vrot.slane %v25_v2, 3  ;;  %v39_v6 = vrot.slane %v31_v3, 3  ;;  %v32_v7 = vld [vmem:[#allocation2 + $0x38] sm:$0xff]  ;;  %v27_v9 = vld [vmem:[#allocation2 + $0x10] sm:$0xff]  ;;  %s64_s13 = sshll.u32 %s138_s0, 4  ;;  %s65_s13 = int_to_ptr.vmem [resolvable:$true] %s64_s13 }
   0x8   :  { %v42_v1 = vshrl.u32 %v41_v0, 7  ;;  %v34_v8 = vrot.slane %v26_v4, 3  ;;  %v28_v10 = vld [vmem:[#allocation2 + $0x18] sm:$0xff]  ;;  %v40_v11 = vrot.slane %v32_v7, 3  ;;  %v35_v12 = vrot.slane %v27_v9, 3  ;;  %v29_v14 = vld [vmem:[#allocation2 + $0x20] sm:$0xff] }
   0x9   :  { %v36_v13 = vrot.slane %v28_v10, 3  ;;  %v30_v15 = vld [vmem:[#allocation2 + $0x28] sm:$0xff]  ;;  %v37_v17 = vrot.slane %v29_v14, 3 }
   0xa   :  { %vm43_vm0 = vcmp.lt.s32.totalorder %v42_v1, 5  ;;  %v38_v18 = vrot.slane %v30_v15, 3 }
   0xb   :  { %v50_v16 = vsel %vm43_vm0, %v39_v6, %v33_v5  ;;  %v51_v19 = vsel %vm43_vm0, %v40_v11, %v34_v8  ;;  %v48_v20 = vsel %vm43_vm0, %v33_v5, %v35_v12  ;;  %v49_v21 = vsel %vm43_vm0, %v34_v8, %v36_v13 }
   0xc   :  { %52 = vst [vmem:[#allocation5] sm:$0xff] %v50_v16  ;;  %v46_v22 = vsel %vm43_vm0, %v35_v12, %v37_v17  ;;  %v47_v23 = vsel %vm43_vm0, %v36_v13, %v38_v18  ;;  %v44_v24 = vsel %vm43_vm0, %v37_v17, %v39_v6  ;;  %v45_v25 = vsel %vm43_vm0, %v38_v18, %v40_v11 }
   0xd   :  { %53 = vst [vmem:[#allocation5 + $0x8] sm:$0xff] %v51_v19 }
   0xe   :  { %54 = vst [vmem:[#allocation5 + $0x10] sm:$0xff] %v48_v20 }
   0xf   :  { %55 = vst [vmem:[#allocation5 + $0x18] sm:$0xff] %v49_v21 }
  0x10   :  { %56 = vst [vmem:[#allocation5 + $0x20] sm:$0xff] %v46_v22 }
  0x11   :  { %57 = vst [vmem:[#allocation5 + $0x28] sm:$0xff] %v47_v23 }
  0x12   :  { %58 = vst [vmem:[#allocation5 + $0x30] sm:$0xff] %v44_v24 }
  0x13   :  { %59 = vst [vmem:[#allocation5 + $0x38] sm:$0xff] %v45_v25 }
  0x14   :  { %72 = dma.vmem_to_hbm [thread:$0]  %s65_s13, 1024, %s67_s16, [#allocation4], %s136_s11, %s136_s11, %s137_s12  }
  0x15   :  { %133 = dma.done.wait [#allocation4], 1024  }
  0x16   :  { %134 = vsyncadd [#allocation4], 4294966272 }
  0x17   :  { %77 = vsyncpa [#allocation3], 1 }
  0x18   :  { %78 = vsyncpa [#allocation4], 1 }

// kernel: tpu_custom_call.1
= control target key start
LH: loop header
LB: loop body
LE: loop exit
PB: predicated region body
PF: predicated region fallthrough
CT: control target
= control target key end

     0   :  { %7 = vsyncpa [#allocation3], 0  ;;  %s1498_s0 = inlined_call_operand.hbm [shape: f32[32,192], index: 0, kind: input, shape index: {}]   ;;  %s1499_s1 = inlined_call_operand.hbm [shape: f32[32,192], index: 1, kind: input, shape index: {}]   ;;  %s1500_s2 = inlined_call_operand.hbm [shape: f32[1,1,256], index: 2, kind: output, shape index: {}]  }
   0x1   :  { %8 = vsyncpa [#allocation6], 0 }
   0x2   :  { %9 = vsyncpa [#allocation4], 0  ;;  %s20_s11 = sshll.u32 %s1498_s0, 4  ;;  %s860_s12 = smov [#allocation2]   ;;  %s21_s11 = int_to_ptr.hbm [resolvable:$true] %s20_s11 }
   0x3   :  { %s22_s13 = sshll.u32 %s860_s12, 4  ;;  %s39_s16 = sshll.u32 %s1499_s1, 4  ;;  %s23_s13 = int_to_ptr.vmem [resolvable:$true] %s22_s13  ;;  %s40_s16 = int_to_ptr.hbm [resolvable:$true] %s39_s16 }
   0x4   :  { %s861_s17 = smov 256   ;;  %s862_s18 = smov 16  }
   0x5   :  { %28 = dma.hbm_to_vmem [thread:$0]  %s21_s11, 1024, %s23_s13, [#allocation3], %s861_s17, %s861_s17, %s862_s18  }
   0x6   :  { %s863_s19 = smov [#allocation5]  }
   0x7   :  { %s41_s20 = sshll.u32 %s863_s19, 4  ;;  %s42_s20 = int_to_ptr.vmem [resolvable:$true] %s41_s20 }
   0x8   :  { %47 = dma.hbm_to_vmem [thread:$0]  %s40_s16, 1024, %s42_s20, [#allocation6], %s861_s17, %s861_s17, %s862_s18  }
   0x9   :  { %854 = dma.done.wait [#allocation3], 1024  }
   0xa   :  { %855 = vsyncadd [#allocation3], 4294966272 }
   0xb   :  { %856 = dma.done.wait [#allocation6], 1024  }
   0xc   :  { %857 = vsyncadd [#allocation6], 4294966272  ;;  %v1501_v0 = vlaneseq  ;;  %v1537_v1 = vmov 0  ;;  %v864_v2 = vmov 0.0   ;;  %v894_v3 = vld [vmem:[#allocation2] sm:$0xff]  ;;  %v896_v4 = vld [vmem:[#allocation2 + $0x8] sm:$0xff] }
   0xd   :  { %v898_v5 = vld [vmem:[#allocation2 + $0x10] sm:$0xff]  ;;  %v900_v6 = vld [vmem:[#allocation2 + $0x18] sm:$0xff]  ;;  %v902_v7 = vld [vmem:[#allocation2 + $0x20] sm:$0xff]  ;;  %vm125_vm1 = vcmask 1040384   ;;  %v126_v9 = vrot.slane %v894_v3, 7  ;;  %v127_v13 = vrot.slane %v896_v4, 7 }
   0xe   :  { %vm888_vm0 = vcmp.lt.s32.totalorder %v1501_v0, 256  ;;  %v904_v8 = vld [vmem:[#allocation2 + $0x28] sm:$0xff]  ;;  %v907_v10 = vld [vmem:[#allocation2 + $0x30] sm:$0xff]  ;;  %v909_v11 = vld [vmem:[#allocation2 + $0x38] sm:$0xff]  ;;  %v128_v14 = vrot.slane %v898_v5, 7  ;;  %v130_v15 = vrot.slane %v900_v6, 7 }
   0xf   :  { %v1538_v1 = vsel %vm888_vm0, 4294967295, %v1537_v1  ;;  %72 = vst.msk [vmem:[#allocation7] sm:$0x3] %vm888_vm0, %v864_v2  ;;  %v81_v12 = vld [vmem:[#allocation5] sm:$0xff]  ;;  %v82_v16 = vld [vmem:[#allocation5 + $0x8] sm:$0xff]  ;;  %v83_v17 = vld [vmem:[#allocation5 + $0x10] sm:$0xff] }
  0x10   :  { %1539 = vst [vmem:[#allocation11_spill] sm:$0xff] %v1538_v1  ;;  %v84_v18 = vld [vmem:[#allocation5 + $0x18] sm:$0xff]  ;;  %v89_v19 = vsub.f32 %v894_v3, %v81_v12  ;;  %v115_v20 = vrot.slane %v907_v10, 7  ;;  %v132_v21 = vrot.slane %v902_v7, 7  ;;  %v134_v22 = vrot.slane %v904_v8, 7  ;;  %v85_v23 = vld [vmem:[#allocation5 + $0x20] sm:$0xff] }
  0x11   :  { %v86_v24 = vld [vmem:[#allocation5 + $0x28] sm:$0xff]  ;;  %v87_v25 = vld [vmem:[#allocation5 + $0x30] sm:$0xff]  ;;  %v90_v26 = vsub.f32 %v896_v4, %v82_v16  ;;  %v91_v27 = vsub.f32 %v898_v5, %v83_v17  ;;  %v92_v28 = vsub.f32 %v900_v6, %v84_v18  ;;  %v116_v29 = vrot.slane %v909_v11, 7  ;;  %v88_v30 = vld [vmem:[#allocation5 + $0x38] sm:$0xff]  ;;  %s865_s0 = smov [#allocation7]   ;;  %s753_s23 = sshll.u32 %s1500_s2, 4  ;;  %s754_s23 = int_to_ptr.hbm [resolvable:$true] %s753_s23 }
  0x12   :  { %v93_v31 = vsub.f32 %v902_v7, %v85_v23  ;;  %v94_v32 = vsub.f32 %v904_v8, %v86_v24  ;;  %v95_v33 = vsub.f32 %v907_v10, %v87_v25  ;;  %v97_v34 = vand.u32 2147483647, %v89_v19  ;;  %s751_s1 = sshll.u32 %s865_s0, 4  ;;  %s752_s1 = int_to_ptr.vmem [resolvable:$true] %s751_s1 }
  0x13   :  { %v96_v35 = vsub.f32 %v909_v11, %v88_v30  ;;  %v98_v36 = vand.u32 2147483647, %v90_v26  ;;  %v99_v37 = vand.u32 2147483647, %v91_v27  ;;  %v100_v38 = vand.u32 2147483647, %v92_v28 }
  0x14   :  { %v101_v39 = vand.u32 2147483647, %v93_v31  ;;  %v102_v40 = vand.u32 2147483647, %v94_v32  ;;  %v927_v41 = vsel %vm125_vm1, %v126_v9, %v128_v14  ;;  %v930_v42 = vsel %vm125_vm1, %v127_v13, %v130_v15 }
  0x15   :  { %v103_v43 = vand.u32 2147483647, %v95_v33  ;;  %v104_v44 = vand.u32 2147483647, %v96_v35  ;;  %v932_v45 = vmul.f32 32.0, %v97_v34  ;;  %v935_v46 = vsel %vm125_vm1, %v128_v14, %v132_v21 }
  0x16   :  { %v937_v47 = vmul.f32 32.0, %v98_v36  ;;  %v939_v48 = vmul.f32 32.0, %v99_v37  ;;  %v941_v49 = vmul.f32 32.0, %v100_v38  ;;  %v943_v50 = vmul.f32 32.0, %v101_v39 }
  0x17   :  { %vm176_vm2 = vcmask 1041408   ;;  %v945_v51 = vmul.f32 32.0, %v102_v40  ;;  %v948_v52 = vsel %vm125_vm1, %v130_v15, %v134_v22  ;;  %v951_v53 = vsel %vm125_vm1, %v132_v21, %v115_v20 }
  0x18   :  { %v954_v54 = vsel %vm125_vm1, %v134_v22, %v116_v29  ;;  %v957_v55 = vsel %vm125_vm1, %v115_v20, %v126_v9  ;;  %v960_v56 = vsel %vm125_vm1, %v116_v29, %v127_v13  ;;  %v150_v57 = vsub.f32 %v898_v5, %v927_v41 }
  0x19   :  { %v151_v58 = vsub.f32 %v900_v6, %v930_v42  ;;  %v148_v59 = vsub.f32 %v894_v3, %v957_v55  ;;  %v149_v60 = vsub.f32 %v896_v4, %v960_v56  ;;  %v152_v61 = vsub.f32 %v902_v7, %v935_v46 }
  0x1a   :  { %v153_v62 = vsub.f32 %v904_v8, %v948_v52  ;;  %v154_v63 = vsub.f32 %v907_v10, %v951_v53  ;;  %v155_v2 = vsub.f32 %v909_v11, %v954_v54  ;;  %v158_v9 = vand.u32 2147483647, %v150_v57 }
  0x1b   :  { %v159_v12 = vand.u32 2147483647, %v151_v58  ;;  %v156_v13 = vand.u32 2147483647, %v148_v59  ;;  %v157_v14 = vand.u32 2147483647, %v149_v60 }
  0x1c   :  { %v160_v15 = vand.u32 2147483647, %v152_v61  ;;  %v111_v16 = vmul.f32 32.0, %v103_v43  ;;  %v978_v17 = vmul.f32 32.0, %v104_v44  ;;  %v161_v18 = vand.u32 2147483647, %v153_v62 }
  0x1d   :  { %v162_v19 = vand.u32 2147483647, %v154_v63  ;;  %v980_v20 = vand.u32 2147483647, %v155_v2  ;;  %v164_v21 = vsub.f32 %v932_v45, %v156_v13  ;;  %v165_v22 = vsub.f32 %v937_v47, %v157_v14 }
  0x1e   :  { %v166_v23 = vsub.f32 %v939_v48, %v158_v9  ;;  %v167_v24 = vsub.f32 %v941_v49, %v159_v12  ;;  %v168_v25 = vsub.f32 %v943_v50, %v160_v15  ;;  %v169_v26 = vsub.f32 %v945_v51, %v161_v18 }
  0x1f   :  { %v172_v27 = vrot.slane %v907_v10, 6  ;;  %v173_v28 = vrot.slane %v909_v11, 6  ;;  %v177_v29 = vrot.slane %v894_v3, 6  ;;  %v178_v30 = vrot.slane %v896_v4, 6 }
  0x20   :  { %v179_v31 = vrot.slane %v898_v5, 6  ;;  %v170_v32 = vsub.f32 %v111_v16, %v162_v19  ;;  %v181_v33 = vrot.slane %v900_v6, 6  ;;  %v183_v34 = vrot.slane %v902_v7, 6 }
  0x21   :  { %v185_v35 = vrot.slane %v904_v8, 6  ;;  %vm227_vm3 = vcmask 1042432   ;;  %v1000_v37 = vsel %vm176_vm2, %v172_v27, %v177_v29  ;;  %v1003_v38 = vsel %vm176_vm2, %v173_v28, %v178_v30 }
  0x22   :  { %v997_v36 = vsel %vm176_vm2, %v177_v29, %v179_v31  ;;  %v223_v39 = vrot.slane %v907_v10, 5  ;;  %v1007_v40 = vsel %vm176_vm2, %v178_v30, %v181_v33  ;;  %v1010_v43 = vsel %vm176_vm2, %v179_v31, %v183_v34 }
  0x23   :  { %v1013_v44 = vsel %vm176_vm2, %v181_v33, %v185_v35  ;;  %v1016_v45 = vsel %vm176_vm2, %v183_v34, %v172_v27  ;;  %v1019_v47 = vsel %vm176_vm2, %v185_v35, %v173_v28  ;;  %v199_v48 = vsub.f32 %v894_v3, %v1000_v37 }
  0x24   :  { %v200_v49 = vsub.f32 %v896_v4, %v1003_v38  ;;  %v201_v50 = vsub.f32 %v898_v5, %v997_v36  ;;  %v202_v51 = vsub.f32 %v900_v6, %v1007_v40  ;;  %v203_v57 = vsub.f32 %v902_v7, %v1010_v43 }
  0x25   :  { %v204_v58 = vsub.f32 %v904_v8, %v1013_v44  ;;  %v205_v59 = vsub.f32 %v907_v10, %v1016_v45  ;;  %v206_v60 = vsub.f32 %v909_v11, %v1019_v47  ;;  %v207_v61 = vand.u32 2147483647, %v199_v48 }
  0x26   :  { %v208_v62 = vand.u32 2147483647, %v200_v49  ;;  %v209_v63 = vand.u32 2147483647, %v201_v50  ;;  %v171_v2 = vsub.f32 %v978_v17, %v980_v20  ;;  %v210_v9 = vand.u32 2147483647, %v202_v51 }
  0x27   :  { %v211_v12 = vand.u32 2147483647, %v203_v57  ;;  %v212_v13 = vand.u32 2147483647, %v204_v58  ;;  %v213_v14 = vand.u32 2147483647, %v205_v59  ;;  %v1039_v16 = vsub.f32 %v164_v21, %v207_v61 }
  0x28   :  { %v214_v15 = vand.u32 2147483647, %v206_v60  ;;  %v224_v18 = vrot.slane %v909_v11, 5  ;;  %v1042_v19 = vsub.f32 %v165_v22, %v208_v62  ;;  %v1044_v27 = vsub.f32 %v166_v23, %v209_v63 }
  0x29   :  { %v1046_v28 = vsub.f32 %v167_v24, %v210_v9  ;;  %v1048_v29 = vsub.f32 %v168_v25, %v211_v12  ;;  %v1050_v30 = vsub.f32 %v169_v26, %v212_v13  ;;  %v1052_v17 = vsub.f32 %v170_v32, %v213_v14 }
  0x2a   :  { %v228_v20 = vrot.slane %v894_v3, 5  ;;  %v229_v31 = vrot.slane %v896_v4, 5  ;;  %v230_v21 = vrot.slane %v898_v5, 5  ;;  %v232_v33 = vrot.slane %v900_v6, 5 }
  0x2b   :  { %v234_v22 = vrot.slane %v902_v7, 5  ;;  %v236_v23 = vrot.slane %v904_v8, 5  ;;  %v274_v26 = vrot.slane %v907_v10, 4  ;;  %v275_v32 = vrot.slane %v909_v11, 4 }
  0x2c   :  { %v1061_v24 = vsel %vm227_vm3, %v223_v39, %v228_v20  ;;  %v1064_v25 = vsel %vm227_vm3, %v224_v18, %v229_v31  ;;  %v1069_v34 = vsel %vm227_vm3, %v228_v20, %v230_v21  ;;  %v1072_v35 = vsel %vm227_vm3, %v229_v31, %v232_v33 }
  0x2d   :  { %1540 = vst [vmem:[#allocation12_spill] sm:$0xff] %v1069_v34  ;;  %v1075_v48 = vsel %vm227_vm3, %v230_v21, %v234_v22  ;;  %v1078_v49 = vsel %vm227_vm3, %v232_v33, %v236_v23  ;;  %v1081_v50 = vsel %vm227_vm3, %v234_v22, %v223_v39  ;;  %v1084_v51 = vsel %vm227_vm3, %v236_v23, %v224_v18 }
  0x2e   :  { %1541 = vst [vmem:[#allocation13_spill] sm:$0xff] %v1072_v35  ;;  %v250_v57 = vsub.f32 %v894_v3, %v1061_v24  ;;  %v251_v58 = vsub.f32 %v896_v4, %v1064_v25  ;;  %v252_v59 = vsub.f32 %v898_v5, %v1069_v34  ;;  %v253_v60 = vsub.f32 %v900_v6, %v1072_v35 }
  0x2f   :  { %1542 = vst [vmem:[#allocation14_spill] sm:$0xff] %v1075_v48  ;;  %v254_v61 = vsub.f32 %v902_v7, %v1075_v48  ;;  %v255_v39 = vsub.f32 %v904_v8, %v1078_v49  ;;  %v256_v62 = vsub.f32 %v907_v10, %v1081_v50  ;;  %v257_v63 = vsub.f32 %v909_v11, %v1084_v51 }
  0x30   :  { %1543 = vst [vmem:[#allocation15_spill] sm:$0xff] %v1078_v49  ;;  %v258_v9 = vand.u32 2147483647, %v250_v57  ;;  %v259_v12 = vand.u32 2147483647, %v251_v58  ;;  %v1102_v20 = vsub.f32 %v171_v2, %v214_v15  ;;  %vm278_vm4 = vcmask 1043456  }
  0x31   :  { %v260_v13 = vand.u32 2147483647, %v252_v59  ;;  %v261_v14 = vand.u32 2147483647, %v253_v60  ;;  %v262_v18 = vand.u32 2147483647, %v254_v61 }
  0x32   :  { %v263_v31 = vand.u32 2147483647, %v255_v39  ;;  %v264_v21 = vand.u32 2147483647, %v256_v62  ;;  %v1104_v33 = vand.u32 2147483647, %v257_v63  ;;  %v266_v22 = vsub.f32 %v1039_v16, %v258_v9 }
  0x33   :  { %v267_v23 = vsub.f32 %v1042_v19, %v259_v12  ;;  %v268_v0 = vsub.f32 %v1044_v27, %v260_v13  ;;  %v269_v1 = vsub.f32 %v1046_v28, %v261_v14  ;;  %v270_v57 = vsub.f32 %v1048_v29, %v262_v18 }
  0x34   :  { %v271_v58 = vsub.f32 %v1050_v30, %v263_v31  ;;  %v272_v59 = vsub.f32 %v1052_v17, %v264_v21  ;;  %v279_v2 = vrot.slane %v894_v3, 4  ;;  %v280_v15 = vrot.slane %v896_v4, 4 }
  0x35   :  { %v281_v60 = vrot.slane %v898_v5, 4  ;;  %v283_v16 = vrot.slane %v900_v6, 4  ;;  %v285_v19 = vrot.slane %v902_v7, 4  ;;  %v287_v27 = vrot.slane %v904_v8, 4 }
  0x36   :  { %v325_v28 = vrot.slane %v907_v10, 3  ;;  %v326_v29 = vrot.slane %v909_v11, 3  ;;  %v1128_v61 = vsel %vm278_vm4, %v274_v26, %v279_v2  ;;  %v1131_v39 = vsel %vm278_vm4, %v275_v32, %v280_v15 }
  0x37   :  { %v1122_v30 = vsel %vm278_vm4, %v279_v2, %v281_v60  ;;  %v1125_v17 = vsel %vm278_vm4, %v280_v15, %v283_v16  ;;  %1546 = vst [vmem:[#allocation18_spill] sm:$0xff] %v1128_v61  ;;  %v1134_v62 = vsel %vm278_vm4, %v281_v60, %v285_v19  ;;  %v1137_v63 = vsel %vm278_vm4, %v283_v16, %v287_v27 }
  0x38   :  { %1544 = vst [vmem:[#allocation16_spill] sm:$0xff] %v1122_v30  ;;  %v1140_v9 = vsel %vm278_vm4, %v285_v19, %v274_v26  ;;  %v1143_v12 = vsel %vm278_vm4, %v287_v27, %v275_v32  ;;  %v301_v13 = vsub.f32 %v894_v3, %v1128_v61  ;;  %v302_v14 = vsub.f32 %v896_v4, %v1131_v39 }
  0x39   :  { %1545 = vst [vmem:[#allocation17_spill] sm:$0xff] %v1125_v17  ;;  %v303_v18 = vsub.f32 %v898_v5, %v1122_v30  ;;  %v304_v31 = vsub.f32 %v900_v6, %v1125_v17  ;;  %v305_v21 = vsub.f32 %v902_v7, %v1134_v62  ;;  %v306_v26 = vsub.f32 %v904_v8, %v1137_v63 }
  0x3a   :  { %1547 = vst [vmem:[#allocation19_spill] sm:$0xff] %v1131_v39  ;;  %v307_v32 = vsub.f32 %v907_v10, %v1140_v9  ;;  %v308_v2 = vsub.f32 %v909_v11, %v1143_v12  ;;  %v273_v15 = vsub.f32 %v1102_v20, %v1104_v33  ;;  %v309_v60 = vand.u32 2147483647, %v301_v13 }
  0x3b   :  { %1548 = vst [vmem:[#allocation20_spill] sm:$0xff] %v1134_v62  ;;  %v310_v16 = vand.u32 2147483647, %v302_v14  ;;  %v311_v19 = vand.u32 2147483647, %v303_v18  ;;  %vm329_vm5 = vcmask 1044480  }
  0x3c   :  { %1549 = vst [vmem:[#allocation21_spill] sm:$0xff] %v1137_v63  ;;  %v312_v27 = vand.u32 2147483647, %v304_v31  ;;  %v313_v17 = vand.u32 2147483647, %v305_v21  ;;  %v1165_v61 = vsub.f32 %v266_v22, %v309_v60  ;;  %v330_v18 = vrot.slane %v894_v3, 3 }
  0x3d   :  { %1550 = vst [vmem:[#allocation22_spill] sm:$0xff] %v1140_v9  ;;  %v314_v30 = vand.u32 2147483647, %v306_v26  ;;  %v315_v39 = vand.u32 2147483647, %v307_v32  ;;  %v1171_v49 = vsub.f32 %v268_v0, %v311_v19  ;;  %v331_v22 = vrot.slane %v896_v4, 3 }
  0x3e   :  { %1551 = vst [vmem:[#allocation23_spill] sm:$0xff] %v1143_v12  ;;  %v316_v63 = vand.u32 2147483647, %v308_v2  ;;  %v1169_v12 = vsub.f32 %v267_v23, %v310_v16  ;;  %v1173_v20 = vsub.f32 %v269_v1, %v312_v27  ;;  %v1175_v33 = vsub.f32 %v270_v57, %v313_v17 }
  0x3f   :  { %v1177_v13 = vsub.f32 %v271_v58, %v314_v30  ;;  %v1179_v14 = vsub.f32 %v272_v59, %v315_v39  ;;  %v332_v31 = vrot.slane %v898_v5, 3  ;;  %v334_v23 = vrot.slane %v900_v6, 3 }
  0x40   :  { %v336_v0 = vrot.slane %v902_v7, 3  ;;  %v338_v1 = vrot.slane %v904_v8, 3  ;;  %v1188_v57 = vsel %vm329_vm5, %v325_v28, %v330_v18  ;;  %v376_v58 = vrot.slane %v907_v10, 2 }
  0x41   :  { %1552 = vst [vmem:[#allocation24_spill] sm:$0xff] %v1188_v57  ;;  %v377_v59 = vrot.slane %v909_v11, 2  ;;  %v1193_v30 = vsel %vm329_vm5, %v330_v18, %v332_v31  ;;  %v1196_v17 = vsel %vm329_vm5, %v331_v22, %v334_v23  ;;  %v1211_v2 = vsel %vm329_vm5, %v326_v29, %v331_v22 }
  0x42   :  { %1553 = vst [vmem:[#allocation25_spill] sm:$0xff] %v1193_v30  ;;  %v1199_v39 = vsel %vm329_vm5, %v332_v31, %v336_v0  ;;  %v1202_v21 = vsel %vm329_vm5, %v336_v0, %v325_v28  ;;  %v1205_v26 = vsel %vm329_vm5, %v334_v23, %v338_v1  ;;  %v1208_v32 = vsel %vm329_vm5, %v338_v1, %v326_v29 }
  0x43   :  { %1554 = vst [vmem:[#allocation26_spill] sm:$0xff] %v1196_v17  ;;  %v352_v60 = vsub.f32 %v894_v3, %v1188_v57  ;;  %v353_v16 = vsub.f32 %v896_v4, %v1211_v2  ;;  %v354_v19 = vsub.f32 %v898_v5, %v1193_v30  ;;  %v355_v28 = vsub.f32 %v900_v6, %v1196_v17 }
  0x44   :  { %1555 = vst [vmem:[#allocation27_spill] sm:$0xff] %v1199_v39  ;;  %v356_v27 = vsub.f32 %v902_v7, %v1199_v39  ;;  %v357_v18 = vsub.f32 %v904_v8, %v1205_v26  ;;  %v358_v29 = vsub.f32 %v907_v10, %v1202_v21  ;;  %v359_v22 = vsub.f32 %v909_v11, %v1208_v32 }
  0x45   :  { %1556 = vst [vmem:[#allocation28_spill] sm:$0xff] %v1202_v21  ;;  %v360_v31 = vand.u32 2147483647, %v352_v60  ;;  %v1229_v23 = vsub.f32 %v273_v15, %v316_v63  ;;  %v361_v0 = vand.u32 2147483647, %v353_v16  ;;  %vm380_vm6 = vcmask 1045504  }
  0x46   :  { %1557 = vst [vmem:[#allocation29_spill] sm:$0xff] %v1205_v26  ;;  %v362_v1 = vand.u32 2147483647, %v354_v19  ;;  %v363_v9 = vand.u32 2147483647, %v355_v28  ;;  %v381_v19 = vrot.slane %v894_v3, 2 }
  0x47   :  { %1558 = vst [vmem:[#allocation30_spill] sm:$0xff] %v1208_v32  ;;  %v364_v62 = vand.u32 2147483647, %v356_v27  ;;  %v365_v17 = vand.u32 2147483647, %v357_v18  ;;  %v368_v26 = vsub.f32 %v1165_v61, %v360_v31  ;;  %v369_v57 = vsub.f32 %v1169_v12, %v361_v0 }
  0x48   :  { %1559 = vst [vmem:[#allocation31_spill] sm:$0xff] %v1211_v2  ;;  %v366_v30 = vand.u32 2147483647, %v358_v29  ;;  %v367_v2 = vand.u32 2147483647, %v359_v22  ;;  %v370_v21 = vsub.f32 %v1171_v49, %v362_v1  ;;  %v371_v60 = vsub.f32 %v1173_v20, %v363_v9 }
  0x49   :  { %v372_v63 = vsub.f32 %v1175_v33, %v364_v62  ;;  %v373_v15 = vsub.f32 %v1177_v13, %v365_v17  ;;  %v382_v28 = vrot.slane %v896_v4, 2  ;;  %v383_v27 = vrot.slane %v898_v5, 2 }
  0x4a   :  { %v374_v16 = vsub.f32 %v1179_v14, %v366_v30  ;;  %v385_v61 = vrot.slane %v900_v6, 2  ;;  %v387_v12 = vrot.slane %v902_v7, 2  ;;  %v389_v49 = vrot.slane %v904_v8, 2 }
  0x4b   :  { %v427_v9 = vrot.slane %v907_v10, 1  ;;  %v1248_v62 = vsel %vm380_vm6, %v381_v19, %v383_v27  ;;  %v1251_v20 = vsel %vm380_vm6, %v376_v58, %v381_v19  ;;  %v1254_v33 = vsel %vm380_vm6, %v377_v59, %v382_v28 }
  0x4c   :  { %1560 = vst [vmem:[#allocation32_spill] sm:$0xff] %v1248_v62  ;;  %v428_v13 = vrot.slane %v909_v11, 1  ;;  %v1258_v14 = vsel %vm380_vm6, %v382_v28, %v385_v61  ;;  %v1261_v30 = vsel %vm380_vm6, %v383_v27, %v387_v12  ;;  %v1264_v17 = vsel %vm380_vm6, %v385_v61, %v389_v49 }
  0x4d   :  { %1561 = vst [vmem:[#allocation33_spill] sm:$0xff] %v1251_v20  ;;  %v1267_v18 = vsel %vm380_vm6, %v387_v12, %v376_v58  ;;  %v1270_v29 = vsel %vm380_vm6, %v389_v49, %v377_v59  ;;  %v403_v22 = vsub.f32 %v894_v3, %v1251_v20  ;;  %v404_v31 = vsub.f32 %v896_v4, %v1254_v33 }
  0x4e   :  { %1562 = vst [vmem:[#allocation34_spill] sm:$0xff] %v1254_v33  ;;  %v405_v0 = vsub.f32 %v898_v5, %v1248_v62  ;;  %v406_v1 = vsub.f32 %v900_v6, %v1258_v14  ;;  %v407_v19 = vsub.f32 %v902_v7, %v1261_v30  ;;  %v408_v58 = vsub.f32 %v904_v8, %v1264_v17 }
  0x4f   :  { %1563 = vst [vmem:[#allocation35_spill] sm:$0xff] %v1258_v14  ;;  %v409_v59 = vsub.f32 %v907_v10, %v1267_v18  ;;  %v410_v28 = vsub.f32 %v909_v11, %v1270_v29  ;;  %v411_v27 = vand.u32 2147483647, %v403_v22  ;;  %v412_v61 = vand.u32 2147483647, %v404_v31 }
  0x50   :  { %1564 = vst [vmem:[#allocation36_spill] sm:$0xff] %v1261_v30  ;;  %v413_v12 = vand.u32 2147483647, %v405_v0  ;;  %v375_v49 = vsub.f32 %v1229_v23, %v367_v2  ;;  %v414_v39 = vand.u32 2147483647, %v406_v1  ;;  %vm431_vm7 = vcmask 1046528  }
  0x51   :  { %1565 = vst [vmem:[#allocation37_spill] sm:$0xff] %v1264_v17  ;;  %v415_v62 = vand.u32 2147483647, %v407_v19  ;;  %v416_v14 = vand.u32 2147483647, %v408_v58  ;;  %v419_v30 = vsub.f32 %v368_v26, %v411_v27  ;;  %v480_v17 = vsub.f32 %v898_v5, %v894_v3 }
  0x52   :  { %1566 = vst [vmem:[#allocation38_spill] sm:$0xff] %v1267_v18  ;;  %v417_v33 = vand.u32 2147483647, %v409_v59  ;;  %v418_v20 = vand.u32 2147483647, %v410_v28  ;;  %v420_v32 = vsub.f32 %v369_v57, %v412_v61  ;;  %v421_v48 = vsub.f32 %v370_v21, %v413_v12 }
  0x53   :  { %1567 = vst [vmem:[#allocation39_spill] sm:$0xff] %v1270_v29  ;;  %v422_v18 = vsub.f32 %v371_v60, %v414_v39  ;;  %v423_v35 = vsub.f32 %v372_v63, %v415_v62  ;;  %v424_v34 = vsub.f32 %v373_v15, %v416_v14  ;;  %v432_v22 = vrot.slane %v894_v3, 1 }
  0x54   :  { %v425_v29 = vsub.f32 %v374_v16, %v417_v33  ;;  %v433_v2 = vrot.slane %v896_v4, 1  ;;  %v434_v23 = vrot.slane %v898_v5, 1  ;;  %v436_v31 = vrot.slane %v900_v6, 1 }
  0x55   :  { %v438_v26 = vrot.slane %v902_v7, 1  ;;  %v1296_v0 = vsub.f32 %v375_v49, %v418_v20  ;;  %v440_v57 = vrot.slane %v904_v8, 1  ;;  %v1300_v39 = vsel %vm431_vm7, %v427_v9, %v432_v22 }
  0x56   :  { %1568 = vst [vmem:[#allocation40_spill] sm:$0xff] %v1300_v39  ;;  %v482_v21 = vsub.f32 %v902_v7, %v898_v5  ;;  %v1305_v60 = vsel %vm431_vm7, %v432_v22, %v434_v23  ;;  %v1308_v63 = vsel %vm431_vm7, %v433_v2, %v436_v31  ;;  %v1323_v33 = vsel %vm431_vm7, %v428_v13, %v433_v2 }
  0x57   :  { %1569 = vst [vmem:[#allocation41_spill] sm:$0xff] %v1305_v60  ;;  %v1311_v15 = vsel %vm431_vm7, %v434_v23, %v438_v26  ;;  %v1314_v16 = vsel %vm431_vm7, %v438_v26, %v427_v9  ;;  %v1317_v62 = vsel %vm431_vm7, %v436_v31, %v440_v57  ;;  %v1320_v20 = vsel %vm431_vm7, %v440_v57, %v428_v13 }
  0x58   :  { %1570 = vst [vmem:[#allocation42_spill] sm:$0xff] %v1308_v63  ;;  %v454_v14 = vsub.f32 %v894_v3, %v1300_v39  ;;  %v455_v1 = vsub.f32 %v896_v4, %v1323_v33  ;;  %v456_v19 = vsub.f32 %v898_v5, %v1305_v60  ;;  %v457_v9 = vsub.f32 %v900_v6, %v1308_v63 }
  0x59   :  { %1571 = vst [vmem:[#allocation43_spill] sm:$0xff] %v1311_v15  ;;  %v458_v58 = vsub.f32 %v902_v7, %v1311_v15  ;;  %v459_v59 = vsub.f32 %v904_v8, %v1317_v62  ;;  %v460_v13 = vsub.f32 %v907_v10, %v1314_v16  ;;  %v461_v28 = vsub.f32 %v909_v11, %v1320_v20 }
  0x5a   :  { %1572 = vst [vmem:[#allocation44_spill] sm:$0xff] %v1317_v62  ;;  %v462_v27 = vand.u32 2147483647, %v454_v14  ;;  %v463_v61 = vand.u32 2147483647, %v455_v1  ;;  %v483_v22 = vsub.f32 %v904_v8, %v900_v6  ;;  %v484_v26 = vsub.f32 %v907_v10, %v902_v7 }
  0x5b   :  { %1573 = vst [vmem:[#allocation45_spill] sm:$0xff] %v1323_v33  ;;  %v464_v12 = vand.u32 2147483647, %v456_v19  ;;  %v465_v49 = vand.u32 2147483647, %v457_v9  ;;  %v485_v14 = vsub.f32 %v909_v11, %v904_v8  ;;  %v1574_v19 = vsub.f32 %v894_v3, %v907_v10 }
  0x5c   :  { %v466_v2 = vand.u32 2147483647, %v458_v58  ;;  %v467_v23 = vand.u32 2147483647, %v459_v59  ;;  %v468_v31 = vand.u32 2147483647, %v460_v13  ;;  %v470_v62 = vsub.f32 %v419_v30, %v462_v27 }
  0x5d   :  { %v469_v57 = vand.u32 2147483647, %v461_v28  ;;  %v471_v15 = vsub.f32 %v420_v32, %v463_v61  ;;  %v472_v63 = vsub.f32 %v421_v48, %v464_v12  ;;  %v473_v60 = vsub.f32 %v422_v18, %v465_v49 }
  0x5e   :  { %v474_v33 = vsub.f32 %v423_v35, %v466_v2  ;;  %v475_v39 = vsub.f32 %v424_v34, %v467_v23  ;;  %v476_v1 = vsub.f32 %v425_v29, %v468_v31  ;;  %v486_v9 = vand.u32 2147483647, %v1574_v19 }
  0x5f   :  { %v1575_v58 = vsub.f32 %v896_v4, %v909_v11  ;;  %v488_v13 = vand.u32 2147483647, %v480_v17  ;;  %v477_v30 = vsub.f32 %v1296_v0, %v469_v57  ;;  %v1576_v48 = vsub.f32 %v900_v6, %v896_v4 }
  0x60   :  { %v490_v34 = vand.u32 2147483647, %v482_v21  ;;  %v491_v32 = vand.u32 2147483647, %v483_v22  ;;  %v492_v18 = vand.u32 2147483647, %v484_v26  ;;  %v494_v29 = vsub.f32 %v470_v62, %v486_v9 }
  0x61   :  { %v487_v59 = vand.u32 2147483647, %v1575_v58  ;;  %v489_v35 = vand.u32 2147483647, %v1576_v48  ;;  %v493_v28 = vand.u32 2147483647, %v485_v14  ;;  %v502_v27 = vsub.f32 %v894_v3, %v951_v53 }
  0x62   :  { %v496_v12 = vsub.f32 %v472_v63, %v488_v13  ;;  %v498_v2 = vsub.f32 %v474_v33, %v490_v34  ;;  %v499_v23 = vsub.f32 %v475_v39, %v491_v32  ;;  %v500_v17 = vsub.f32 %v476_v1, %v492_v18 }
  0x63   :  { %v495_v61 = vsub.f32 %v471_v15, %v487_v59  ;;  %v497_v49 = vsub.f32 %v473_v60, %v489_v35  ;;  %v503_v0 = vsub.f32 %v896_v4, %v954_v54  ;;  %v504_v31 = vsub.f32 %v898_v5, %v957_v55 }
  0x64   :  { %v505_v21 = vsub.f32 %v900_v6, %v960_v56  ;;  %v506_v62 = vsub.f32 %v902_v7, %v927_v41  ;;  %v507_v53 = vsub.f32 %v904_v8, %v930_v42  ;;  %v508_v60 = vsub.f32 %v907_v10, %v935_v46 }
  0x65   :  { %v509_v39 = vsub.f32 %v909_v11, %v948_v52  ;;  %v510_v63 = vand.u32 2147483647, %v502_v27  ;;  %v511_v54 = vand.u32 2147483647, %v503_v0  ;;  %v512_v15 = vand.u32 2147483647, %v504_v31 }
  0x66   :  { %v501_v33 = vsub.f32 %v477_v30, %v493_v28  ;;  %v513_v55 = vand.u32 2147483647, %v505_v21  ;;  %v514_v22 = vand.u32 2147483647, %v506_v62  ;;  %v515_v26 = vand.u32 2147483647, %v507_v53 }
  0x67   :  { %v516_v56 = vand.u32 2147483647, %v508_v60  ;;  %v517_v57 = vand.u32 2147483647, %v509_v39  ;;  %v518_v14 = vsub.f32 %v494_v29, %v510_v63  ;;  %v526_v41 = vsub.f32 %v894_v3, %v1016_v45  ;;  %v1577_v31 = vld [vmem:[#allocation12_spill] sm:$0xff]  ;;  %v1578_v62 = vld [vmem:[#allocation13_spill] sm:$0xff] }
  0x68   :  { %v519_v42 = vsub.f32 %v495_v61, %v511_v54  ;;  %v520_v1 = vsub.f32 %v496_v12, %v512_v15  ;;  %v521_v19 = vsub.f32 %v497_v49, %v513_v55  ;;  %v522_v46 = vsub.f32 %v498_v2, %v514_v22  ;;  %v1579_v53 = vld [vmem:[#allocation14_spill] sm:$0xff]  ;;  %v1580_v39 = vld [vmem:[#allocation15_spill] sm:$0xff] }
  0x69   :  { %v523_v9 = vsub.f32 %v499_v23, %v515_v26  ;;  %v524_v58 = vsub.f32 %v500_v17, %v516_v56  ;;  %v527_v52 = vsub.f32 %v896_v4, %v1019_v47  ;;  %v528_v59 = vsub.f32 %v898_v5, %v1000_v37 }
  0x6a   :  { %v529_v13 = vsub.f32 %v900_v6, %v1003_v38  ;;  %v530_v30 = vsub.f32 %v902_v7, %v997_v36  ;;  %v531_v45 = vsub.f32 %v904_v8, %v1007_v40  ;;  %v532_v48 = vsub.f32 %v907_v10, %v1010_v43 }
  0x6b   :  { %v533_v35 = vsub.f32 %v909_v11, %v1013_v44  ;;  %v534_v34 = vand.u32 2147483647, %v526_v41  ;;  %v535_v47 = vand.u32 2147483647, %v527_v52  ;;  %v536_v32 = vand.u32 2147483647, %v528_v59 }
  0x6c   :  { %v525_v18 = vsub.f32 %v501_v33, %v517_v57  ;;  %v537_v37 = vand.u32 2147483647, %v529_v13  ;;  %v538_v28 = vand.u32 2147483647, %v530_v30  ;;  %v539_v29 = vand.u32 2147483647, %v531_v45 }
  0x6d   :  { %v540_v38 = vand.u32 2147483647, %v532_v48  ;;  %v541_v27 = vand.u32 2147483647, %v533_v35  ;;  %v542_v61 = vsub.f32 %v518_v14, %v534_v34  ;;  %v550_v36 = vsub.f32 %v894_v3, %v1081_v50  ;;  %v1581_v57 = vld [vmem:[#allocation22_spill] sm:$0xff]  ;;  %v1584_v30 = vld [vmem:[#allocation19_spill] sm:$0xff] }
  0x6e   :  { %v543_v40 = vsub.f32 %v519_v42, %v535_v47  ;;  %v544_v12 = vsub.f32 %v520_v1, %v536_v32  ;;  %v545_v49 = vsub.f32 %v521_v19, %v537_v37  ;;  %v546_v43 = vsub.f32 %v522_v46, %v538_v28  ;;  %v1583_v59 = vld [vmem:[#allocation18_spill] sm:$0xff]  ;;  %v1585_v48 = vld [vmem:[#allocation16_spill] sm:$0xff]  ;;  %v1586_v34 = vld [vmem:[#allocation17_spill] sm:$0xff] }
  0x6f   :  { %v547_v2 = vsub.f32 %v523_v9, %v539_v29  ;;  %v548_v23 = vsub.f32 %v524_v58, %v540_v38  ;;  %v551_v44 = vsub.f32 %v896_v4, %v1084_v51  ;;  %v552_v17 = vsub.f32 %v898_v5, %v1061_v24  ;;  %v1582_v58 = vld [vmem:[#allocation23_spill] sm:$0xff]  ;;  %v1587_v32 = vld [vmem:[#allocation20_spill] sm:$0xff]  ;;  %v1588_v37 = vld [vmem:[#allocation21_spill] sm:$0xff] }
  0x70   :  { %v553_v0 = vsub.f32 %v900_v6, %v1064_v25  ;;  %v554_v21 = vsub.f32 %v902_v7, %v1577_v31  ;;  %v555_v50 = vsub.f32 %v904_v8, %v1578_v62  ;;  %v556_v60 = vsub.f32 %v907_v10, %v1579_v53  ;;  %v1590_v53 = vld [vmem:[#allocation30_spill] sm:$0xff] }
  0x71   :  { %v557_v63 = vsub.f32 %v909_v11, %v1580_v39  ;;  %v558_v54 = vand.u32 2147483647, %v550_v36  ;;  %v559_v51 = vand.u32 2147483647, %v551_v44  ;;  %v560_v15 = vand.u32 2147483647, %v552_v17 }
  0x72   :  { %v549_v33 = vsub.f32 %v525_v18, %v541_v27  ;;  %v561_v24 = vand.u32 2147483647, %v553_v0  ;;  %v562_v55 = vand.u32 2147483647, %v554_v21  ;;  %v563_v22 = vand.u32 2147483647, %v555_v50 }
  0x73   :  { %v564_v25 = vand.u32 2147483647, %v556_v60  ;;  %v565_v26 = vand.u32 2147483647, %v557_v63  ;;  %v566_v56 = vsub.f32 %v542_v61, %v558_v54  ;;  %v574_v14 = vsub.f32 %v894_v3, %v1581_v57  ;;  %v1591_v39 = vld [vmem:[#allocation24_spill] sm:$0xff]  ;;  %v1592_v54 = vld [vmem:[#allocation31_spill] sm:$0xff] }
  0x74   :  { %v567_v41 = vsub.f32 %v543_v40, %v559_v51  ;;  %v568_v42 = vsub.f32 %v544_v12, %v560_v15  ;;  %v569_v1 = vsub.f32 %v545_v49, %v561_v24  ;;  %v570_v19 = vsub.f32 %v546_v43, %v562_v55  ;;  %v1593_v15 = vld [vmem:[#allocation25_spill] sm:$0xff]  ;;  %v1594_v24 = vld [vmem:[#allocation26_spill] sm:$0xff] }
  0x75   :  { %v571_v46 = vsub.f32 %v547_v2, %v563_v22  ;;  %v572_v9 = vsub.f32 %v548_v23, %v564_v25  ;;  %v575_v52 = vsub.f32 %v896_v4, %v1582_v58  ;;  %v576_v13 = vsub.f32 %v898_v5, %v1583_v59  ;;  %v1589_v23 = vld [vmem:[#allocation28_spill] sm:$0xff]  ;;  %v1595_v22 = vld [vmem:[#allocation27_spill] sm:$0xff]  ;;  %v1597_v59 = vld [vmem:[#allocation38_spill] sm:$0xff] }
  0x76   :  { %v577_v45 = vsub.f32 %v900_v6, %v1584_v30  ;;  %v578_v35 = vsub.f32 %v902_v7, %v1585_v48  ;;  %v579_v47 = vsub.f32 %v904_v8, %v1586_v34  ;;  %v580_v18 = vsub.f32 %v907_v10, %v1587_v32  ;;  %v1598_v32 = vld [vmem:[#allocation39_spill] sm:$0xff] }
  0x77   :  { %v581_v28 = vsub.f32 %v909_v11, %v1588_v37  ;;  %v582_v29 = vand.u32 2147483647, %v574_v14  ;;  %v583_v38 = vand.u32 2147483647, %v575_v52  ;;  %v584_v27 = vand.u32 2147483647, %v576_v13 }
  0x78   :  { %v573_v61 = vsub.f32 %v549_v33, %v565_v26  ;;  %v585_v36 = vand.u32 2147483647, %v577_v45  ;;  %v586_v40 = vand.u32 2147483647, %v578_v35  ;;  %v587_v12 = vand.u32 2147483647, %v579_v47 }
  0x79   :  { %v588_v49 = vand.u32 2147483647, %v580_v18  ;;  %v589_v43 = vand.u32 2147483647, %v581_v28  ;;  %v590_v2 = vsub.f32 %v566_v56, %v582_v29  ;;  %v598_v44 = vsub.f32 %v894_v3, %v1589_v23  ;;  %v1596_v26 = vld [vmem:[#allocation29_spill] sm:$0xff]  ;;  %v1600_v29 = vld [vmem:[#allocation34_spill] sm:$0xff] }
  0x7a   :  { %v591_v17 = vsub.f32 %v567_v41, %v583_v38  ;;  %v592_v0 = vsub.f32 %v568_v42, %v584_v27  ;;  %v593_v31 = vsub.f32 %v569_v1, %v585_v36  ;;  %v594_v21 = vsub.f32 %v570_v19, %v586_v40  ;;  %v1599_v37 = vld [vmem:[#allocation33_spill] sm:$0xff]  ;;  %v1601_v27 = vld [vmem:[#allocation32_spill] sm:$0xff]  ;;  %v1602_v36 = vld [vmem:[#allocation35_spill] sm:$0xff] }
  0x7b   :  { %v595_v62 = vsub.f32 %v571_v46, %v587_v12  ;;  %v596_v50 = vsub.f32 %v572_v9, %v588_v49  ;;  %v599_v60 = vsub.f32 %v896_v4, %v1590_v53  ;;  %v600_v63 = vsub.f32 %v898_v5, %v1591_v39  ;;  %v1603_v12 = vld [vmem:[#allocation36_spill] sm:$0xff] }
  0x7c   :  { %v601_v51 = vsub.f32 %v900_v6, %v1592_v54  ;;  %v602_v33 = vsub.f32 %v902_v7, %v1593_v15  ;;  %v603_v55 = vsub.f32 %v904_v8, %v1594_v24  ;;  %v604_v25 = vsub.f32 %v907_v10, %v1595_v22  ;;  %v1605_v22 = vld [vmem:[#allocation40_spill] sm:$0xff] }
  0x7d   :  { %v605_v56 = vsub.f32 %v909_v11, %v1596_v26  ;;  %v606_v57 = vand.u32 2147483647, %v598_v44  ;;  %v607_v14 = vand.u32 2147483647, %v599_v60  ;;  %v608_v41 = vand.u32 2147483647, %v600_v63 }
  0x7e   :  { %v597_v42 = vsub.f32 %v573_v61, %v589_v43  ;;  %v609_v1 = vand.u32 2147483647, %v601_v51  ;;  %v610_v19 = vand.u32 2147483647, %v602_v33  ;;  %v611_v46 = vand.u32 2147483647, %v603_v55 }
  0x7f   :  { %v612_v9 = vand.u32 2147483647, %v604_v25  ;;  %v613_v58 = vand.u32 2147483647, %v605_v56  ;;  %v614_v52 = vsub.f32 %v590_v2, %v606_v57  ;;  %v622_v13 = vsub.f32 %v894_v3, %v1597_v59  ;;  %v1604_v43 = vld [vmem:[#allocation37_spill] sm:$0xff]  ;;  %v1608_v57 = vld [vmem:[#allocation42_spill] sm:$0xff] }
  0x80   :  { %v615_v30 = vsub.f32 %v591_v17, %v607_v14  ;;  %v616_v45 = vsub.f32 %v592_v0, %v608_v41  ;;  %v617_v48 = vsub.f32 %v593_v31, %v609_v1  ;;  %v618_v35 = vsub.f32 %v594_v21, %v610_v19  ;;  %v1606_v26 = vld [vmem:[#allocation45_spill] sm:$0xff]  ;;  %v1609_v41 = vld [vmem:[#allocation43_spill] sm:$0xff]  ;;  %v1610_v1 = vld [vmem:[#allocation44_spill] sm:$0xff] }
  0x81   :  { %v619_v34 = vsub.f32 %v595_v62, %v611_v46  ;;  %v620_v47 = vsub.f32 %v596_v50, %v612_v9  ;;  %v623_v18 = vsub.f32 %v896_v4, %v1598_v32  ;;  %v624_v28 = vsub.f32 %v898_v5, %v1599_v37  ;;  %v776_v32 = vld [vmem:[#allocation2 + $0x28] sm:$0xff]  ;;  %v777_v37 = vld [vmem:[#allocation2 + $0x10] sm:$0xff] }
  0x82   :  { %v625_v38 = vsub.f32 %v900_v6, %v1600_v29  ;;  %v626_v61 = vsub.f32 %v902_v7, %v1601_v27  ;;  %v627_v40 = vsub.f32 %v904_v8, %v1602_v36  ;;  %v628_v49 = vsub.f32 %v907_v10, %v1603_v12 }
  0x83   :  { %v629_v2 = vsub.f32 %v909_v11, %v1604_v43  ;;  %v630_v23 = vand.u32 2147483647, %v622_v13  ;;  %v631_v44 = vand.u32 2147483647, %v623_v18  ;;  %v632_v17 = vand.u32 2147483647, %v624_v28 }
  0x84   :  { %v621_v0 = vsub.f32 %v597_v42, %v613_v58  ;;  %v633_v31 = vand.u32 2147483647, %v625_v38  ;;  %v634_v21 = vand.u32 2147483647, %v626_v61  ;;  %v635_v62 = vand.u32 2147483647, %v627_v40 }
  0x85   :  { %v636_v50 = vand.u32 2147483647, %v628_v49  ;;  %v637_v53 = vand.u32 2147483647, %v629_v2  ;;  %v1453_v60 = vsub.f32 %v614_v52, %v630_v23  ;;  %v646_v39 = vsub.f32 %v894_v3, %v1314_v16  ;;  %v1607_v16 = vld [vmem:[#allocation41_spill] sm:$0xff]  ;;  %v781_v61 = vld [vmem:[#allocation2 + $0x20] sm:$0xff] }
  0x86   :  { %v1457_v63 = vsub.f32 %v615_v30, %v631_v44  ;;  %v1459_v54 = vsub.f32 %v616_v45, %v632_v17  ;;  %v1461_v51 = vsub.f32 %v617_v48, %v633_v31  ;;  %v1463_v15 = vsub.f32 %v618_v35, %v634_v21  ;;  %v774_v30 = vld [vmem:[#allocation2] sm:$0xff]  ;;  %v778_v28 = vld [vmem:[#allocation2 + $0x30] sm:$0xff]  ;;  %v779_v38 = vld [vmem:[#allocation2 + $0x18] sm:$0xff] }
  0x87   :  { %v1465_v33 = vsub.f32 %v619_v34, %v635_v62  ;;  %v1467_v24 = vsub.f32 %v620_v47, %v636_v50  ;;  %v647_v55 = vsub.f32 %v896_v4, %v1320_v20  ;;  %v648_v25 = vsub.f32 %v898_v5, %v1605_v22  ;;  %v775_v47 = vld [vmem:[#allocation2 + $0x8] sm:$0xff] }
  0x88   :  { %v649_v3 = vsub.f32 %v900_v6, %v1606_v26  ;;  %v650_v56 = vsub.f32 %v902_v7, %v1607_v16  ;;  %v651_v14 = vsub.f32 %v904_v8, %v1608_v57  ;;  %v652_v42 = vsub.f32 %v907_v10, %v1609_v41 }
  0x89   :  { %v653_v19 = vsub.f32 %v909_v11, %v1610_v1  ;;  %v654_v46 = vand.u32 2147483647, %v646_v39  ;;  %v655_v4 = vand.u32 2147483647, %v647_v55  ;;  %v656_v20 = vand.u32 2147483647, %v648_v25 }
  0x8a   :  { %v645_v9 = vsub.f32 %v621_v0, %v637_v53  ;;  %v657_v5 = vand.u32 2147483647, %v649_v3  ;;  %v658_v58 = vand.u32 2147483647, %v650_v56  ;;  %v659_v52 = vand.u32 2147483647, %v651_v14 }
  0x8b   :  { %v660_v6 = vand.u32 2147483647, %v652_v42  ;;  %v661_v59 = vand.u32 2147483647, %v653_v19  ;;  %v662_v13 = vsub.f32 %v1453_v60, %v654_v46  ;;  %v670_v8 = vsub.f32 %v774_v30, %v902_v7  ;;  %v780_v7 = vld [vmem:[#allocation2 + $0x38] sm:$0xff] }
  0x8c   :  { %v663_v45 = vsub.f32 %v1457_v63, %v655_v4  ;;  %v664_v10 = vsub.f32 %v1459_v54, %v656_v20  ;;  %v665_v11 = vsub.f32 %v1461_v51, %v657_v5  ;;  %v666_v48 = vsub.f32 %v1463_v15, %v658_v58 }
  0x8d   :  { %v667_v35 = vsub.f32 %v1465_v33, %v659_v52  ;;  %v668_v34 = vsub.f32 %v1467_v24, %v660_v6  ;;  %v671_v18 = vsub.f32 %v775_v47, %v776_v32  ;;  %v672_v29 = vsub.f32 %v777_v37, %v778_v28 }
  0x8e   :  { %v673_v27 = vsub.f32 %v779_v38, %v780_v7  ;;  %v674_v36 = vsub.f32 %v781_v61, %v774_v30  ;;  %v675_v40 = vsub.f32 %v776_v32, %v775_v47  ;;  %v676_v12 = vsub.f32 %v778_v28, %v777_v37 }
  0x8f   :  { %v677_v49 = vsub.f32 %v780_v7, %v779_v38  ;;  %v678_v43 = vand.u32 2147483647, %v670_v8  ;;  %v679_v2 = vand.u32 2147483647, %v671_v18  ;;  %v680_v23 = vand.u32 2147483647, %v672_v29 }
  0x90   :  { %v669_v44 = vsub.f32 %v645_v9, %v661_v59  ;;  %v681_v17 = vand.u32 2147483647, %v673_v27  ;;  %v682_v0 = vand.u32 2147483647, %v674_v36  ;;  %v683_v31 = vand.u32 2147483647, %v675_v40 }
  0x91   :  { %v684_v21 = vand.u32 2147483647, %v676_v12  ;;  %v685_v62 = vand.u32 2147483647, %v677_v49  ;;  %v686_v50 = vmul.f32 0.5, %v678_v43  ;;  %v687_v53 = vmul.f32 0.5, %v679_v2 }
  0x92   :  { %v688_v60 = vmul.f32 0.5, %v680_v23  ;;  %v689_v39 = vmul.f32 0.5, %v681_v17  ;;  %v690_v63 = vmul.f32 0.5, %v682_v0  ;;  %v691_v54 = vmul.f32 0.5, %v683_v31 }
  0x93   :  { %v692_v51 = vmul.f32 0.5, %v684_v21  ;;  %v693_v15 = vmul.f32 0.5, %v685_v62  ;;  %v694_v33 = vsub.f32 %v662_v13, %v686_v50  ;;  %v695_v24 = vsub.f32 %v663_v45, %v687_v53 }
  0x94   :  { %v696_v55 = vsub.f32 %v664_v10, %v688_v60  ;;  %v697_v22 = vsub.f32 %v665_v11, %v689_v39  ;;  %v698_v25 = vsub.f32 %v666_v48, %v690_v63  ;;  %v699_v26 = vsub.f32 %v667_v35, %v691_v54 }
  0x95   :  { %v700_v3 = vsub.f32 %v668_v34, %v692_v51  ;;  %v701_v16 = vsub.f32 %v669_v44, %v693_v15  ;;  %v1611_v9 = vlaneseq  ;;  %v732_v34 = vld [vmem:[#allocation7] sm:$0x3] }
  0x96   :  { %v702_v56 = vadd.f32 %v696_v55, %v694_v33  ;;  %v711_v57 = vadd.f32 %v697_v22, %v695_v24 }
  0x97   :  { %v724_v5 = vand.u32 127, %v1611_v9 }
  0x98   :  { %v703_v14 = vadd.f32 %v702_v56, %v698_v25  ;;  %v712_v41 = vadd.f32 %v711_v57, %v699_v26 }
  0x99   :  { %v725_v13 = vadd.s32 128, %v724_v5 }
  0x9a   :  { %v704_v42 = vadd.f32 %v703_v14, %v700_v3  ;;  %v713_v1 = vadd.f32 %v712_v41, %v701_v16 }
  0x9b   :  { %vm731_vm8 = vcmp.lt.s32.totalorder %v725_v13, 192 }
  0x9c   :  { %v705_v19 = vrot.slane %v704_v42, 4  ;;  %v714_v46 = vrot.slane %v713_v1, 4 }
  0x9e   :  { %v706_v4 = vadd.f32 %v705_v19, %v704_v42  ;;  %v715_v20 = vadd.f32 %v714_v46, %v713_v1 }
  0xa0   :  { %v707_v58 = vrot.slane %v706_v4, 2  ;;  %v716_v52 = vrot.slane %v715_v20, 2 }
  0xa2   :  { %v708_v6 = vadd.f32 %v707_v58, %v706_v4  ;;  %v717_v59 = vadd.f32 %v716_v52, %v715_v20 }
  0xa4   :  { %v709_v30 = vrot.slane %v708_v6, 1  ;;  %v718_v8 = vrot.slane %v717_v59, 1 }
  0xa6   :  { %v710_v45 = vadd.f32 %v709_v30, %v708_v6  ;;  %v719_v10 = vadd.f32 %v718_v8, %v717_v59 }
  0xa8   :  { %v721_v11 = vmul.f32 0.0009765625, %v719_v10  ;;  %v720_v48 = vmul.f32 0.0009765625, %v710_v45 }
  0xaa   :  { %v734_v35 = vsel %vm731_vm8, %v721_v11, 0.0 }
  0xab   :  { %v737_v47 = vrot.slane %v734_v35, 7 }
  0xad   :  { %v738_v32 = vsel %vm125_vm1, %v720_v48, %v737_v47 }
  0xae   :  { %v740_v18 = vadd.f32 %v738_v32, %v732_v34 }
  0xb0   :  { %745 = vst.msk [vmem:[#allocation7] sm:$0x3] %vm888_vm0, %v740_v18 }
  0xb1   :  { %756 = dma.vmem_to_hbm [thread:$0]  %s752_s1, 32, %s754_s23, [#allocation4]  }
  0xb2   :  { %858 = dma.done.wait [#allocation4], 32  }
  0xb3   :  { %859 = vsyncadd [#allocation4], 4294967264 }
  0xb4   :  { %761 = vsyncpa [#allocation3], 1 }
  0xb5   :  { %762 = vsyncpa [#allocation6], 1 }
  0xb6   :  { %763 = vsyncpa [#allocation4], 1 }

</bundles_post_ra>
